<compile_context>
chip_gen: v5e
topology: v5e:2x2
jax: 0.10.0
libtpu: 0.0.40
codegen_flags: <defaults>
</compile_context>

<pallas_src>
import jax
import jax.numpy as jnp
import numpy as np
from jax.experimental import pallas as pl
from jax.experimental.pallas import tpu as pltpu

HIDDEN = 32


# ----------------------------- Pallas kernel --------------------------------
def temporal_gnn_kernel(
    xw_ref,      # VMEM (B*N, T*F)     bf16  rows=(batch,node), lanes=(period,feature)
    a_ref,       # VMEM (N, N)         bf16  normalized adjacency  A[target, source]
    wbig_ref,    # VMEM (T*F, 2*T*H)   bf16  block-diag fused gate weights [z | h~]
    bbig_ref,    # VMEM (1, 2*T*H)     f32   fused gate biases
    pmat_ref,    # VMEM (T*H, H)       bf16  kron(softmax(attention), I_H)
    wout_ref,    # VMEM (H, 128)       bf16  output Linear weight, zero-padded
    bout_ref,    # VMEM (1, 128)       f32   output Linear bias, zero-padded
    out_ref,     # VMEM (B*N, 128)     f32   lane-dense output slab
):
    n_nodes = a_ref.shape[0]
    batch = xw_ref.shape[0] // n_nodes
    th = pmat_ref.shape[0]                       # T * H

    # (1) Whole gate path (GCNConv_z|h weights fused with GRU linear_z|h, all
    #     periods at once) as ONE 2-D MXU matmul over every (batch, node) row.
    pre = jnp.dot(xw_ref[...], wbig_ref[...],
                  preferred_element_type=jnp.float32)            # (B*N, 2*T*H) f32
    pre_bf = pre.astype(jnp.bfloat16)

    # (2) Normalized-adjacency aggregation: per-batch 2-D matmuls (static unroll,
    #     tile-aligned row slices), rows stay (batch, node).  Bias added after
    #     aggregation, matching GCNConv semantics.
    a = a_ref[...]
    g = jnp.concatenate(
        [jnp.dot(a, pre_bf[b * n_nodes:(b + 1) * n_nodes, :],
                 preferred_element_type=jnp.float32)
         for b in range(batch)],
        axis=0,
    ) + bbig_ref[...]                                            # (B*N, 2*T*H) f32

    # (3) Gates (hidden state is 0 every period ⇒ z*H and the reset branch vanish).
    z = jax.nn.sigmoid(g[:, :th])
    h_tilde = jnp.tanh(g[:, th:])
    hp = (1.0 - z) * h_tilde                                     # (B*N, T*H) f32

    # (4) Attention-weighted sum over periods as a tiny 2-D matmul.
    acc = jnp.dot(hp.astype(jnp.bfloat16), pmat_ref[...],
                  preferred_element_type=jnp.float32)            # (B*N, H) f32

    # (5) ReLU + output Linear, lane-dense (padded to 128 cols → unmasked stores).
    y = jnp.dot(jnp.maximum(acc, 0.0).astype(jnp.bfloat16), wout_ref[...],
                preferred_element_type=jnp.float32) + bout_ref[...]
    out_ref[...] = y.astype(out_ref.dtype)


# ------------------------------- JAX glue ------------------------------------
def gcn_norm_dense(edge_index, num_nodes):
    """Dense Â = D^{-1/2}(A + I)D^{-1/2}; Â[target, source] (PyG gcn_norm,
    add_remaining_self_loops: a self loop is only added where none exists)."""
    src, dst = edge_index[0], edge_index[1]
    a = jnp.zeros((num_nodes, num_nodes), jnp.float32)
    a = a.at[dst, src].add(1.0)
    diag = jnp.diagonal(a)
    a = a + jnp.diag(jnp.where(diag > 0, 0.0, 1.0))
    deg = jnp.sum(a, axis=1)
    dinv = jnp.where(deg > 0, 1.0 / jnp.sqrt(deg), 0.0)
    return dinv[:, None] * a * dinv[None, :]


def temporal_gnn_forward(x, edge_index, params):
    """x: [B, N, F, T] (PyTorch A3TGCN2 layout). Returns [B, N, T]."""
    B, N, F, T = x.shape
    H = HIDDEN
    out_pad = ((T + 127) // 128) * 128          # lane-dense output width (128 here)

    # ---- layout plumbing only (XLA side) ----
    # rows = (batch, node); lanes = (period, feature)  -> lane width T*F, not F.
    xw = jnp.transpose(x, (0, 1, 3, 2)).reshape(B * N, T * F).astype(jnp.bfloat16)
    a_hat = gcn_norm_dense(edge_index, N).astype(jnp.bfloat16)
    probs = jax.nn.softmax(params['attention']).astype(jnp.float32)

    # ---- parameter fusion / packing ----
    # H == 0 every period ⇒ reset gate (conv_r / lin_r) and hidden-fed halves are
    # dead; GCNConv → Linear is affine, so fold:  W_c = conv_w @ lin_w[:H],
    # b_c = conv_b @ lin_w[:H] + lin_b  (bias applied after the Â aggregation).
    wcz = params['conv_z_w'] @ params['lin_z_w'][:H]
    wch = params['conv_h_w'] @ params['lin_h_w'][:H]
    bcz = params['conv_z_b'] @ params['lin_z_w'][:H] + params['lin_z_b']
    bch = params['conv_h_b'] @ params['lin_h_w'][:H] + params['lin_h_b']
    eye_t = jnp.eye(T, dtype=jnp.float32)
    # Block-diagonal over periods; columns ordered [z-half | h~-half], each (period, hidden).
    wbig = jnp.concatenate([jnp.kron(eye_t, wcz), jnp.kron(eye_t, wch)],
                           axis=1).astype(jnp.bfloat16)                    # (T*F, 2*T*H)
    bbig = jnp.concatenate([jnp.tile(bcz, T), jnp.tile(bch, T)])[None, :]  # (1, 2*T*H) f32
    # Attention-weighted period sum as a matmul: P = kron(probs, I_H).
    pmat = jnp.kron(probs[:, None],
                    jnp.eye(H, dtype=jnp.float32)).astype(jnp.bfloat16)    # (T*H, H)
    # Output head, zero-padded to a lane-dense 128-wide slab.
    wout = jnp.zeros((H, out_pad), jnp.float32).at[:, :T].set(
        params['out_w']).astype(jnp.bfloat16)
    bout = jnp.zeros((1, out_pad), jnp.float32).at[:, :T].set(params['out_b'][None, :])

    vmem = pl.BlockSpec(memory_space=pltpu.MemorySpace.VMEM)
    y = pl.pallas_call(
        temporal_gnn_kernel,
        out_shape=jax.ShapeDtypeStruct((B * N, out_pad), jnp.float32),
        in_specs=[vmem] * 7,
        out_specs=vmem,
    )(xw, a_hat, wbig, bbig, pmat, wout, bout)

    # Rows are already (batch, node): no transpose, just un-pad the lane dim.
    return y.reshape(B, N, out_pad)[:, :, :T]


def reference_forward(x, edge_index, params):
    """Pure-JAX reference of the same forward pass (un-simplified cell, f32)."""
    B, N, F, T = x.shape
    a = gcn_norm_dense(edge_index, N)
    probs = jax.nn.softmax(params['attention'])
    h_acc = jnp.zeros((B, N, HIDDEN), jnp.float32)
    for t in range(T):
        xp = x[:, :, :, t]
        gcn = lambda w, b: jnp.einsum('ij,bjo->bio', a, xp @ w) + b
        cz = gcn(params['conv_z_w'], params['conv_z_b'])
        cr = gcn(params['conv_r_w'], params['conv_r_b'])
        ch = gcn(params['conv_h_w'], params['conv_h_b'])
        h0 = jnp.zeros((B, N, HIDDEN), jnp.float32)
        lin = lambda c, h, w, b: jnp.concatenate([c, h], -1) @ w + b
        z = jax.nn.sigmoid(lin(cz, h0, params['lin_z_w'], params['lin_z_b']))
        r = jax.nn.sigmoid(lin(cr, h0, params['lin_r_w'], params['lin_r_b']))
        ht = jnp.tanh(lin(ch, h0 * r, params['lin_h_w'], params['lin_h_b']))
        h_acc = h_acc + probs[t] * (z * h0 + (1.0 - z) * ht)
    return jax.nn.relu(h_acc) @ params['out_w'] + params['out_b']


def init_params(key, node_features, periods):
    ks = jax.random.split(key, 16)
    u = lambda k, shape, b: jax.random.uniform(k, shape, jnp.float32, -b, b)
    p = {}
    # GCNConv: weight stored as (in, out); bias zeros (PyG default).
    for i, g in enumerate(('z', 'r', 'h')):
        p[f'conv_{g}_w'] = u(ks[i], (node_features, HIDDEN),
                             1.0 / np.sqrt(node_features))
        p[f'conv_{g}_b'] = jnp.zeros((HIDDEN,), jnp.float32)
    # GRU linears: torch Linear(64, 32) — stored transposed as (64, 32).
    for i, g in enumerate(('z', 'r', 'h')):
        b = 1.0 / np.sqrt(2 * HIDDEN)
        p[f'lin_{g}_w'] = u(ks[3 + 2 * i], (2 * HIDDEN, HIDDEN), b)
        p[f'lin_{g}_b'] = u(ks[4 + 2 * i], (HIDDEN,), b)
    # Attention over periods (torch.nn.init.uniform_ -> U[0, 1)).
    p['attention'] = jax.random.uniform(ks[9], (periods,), jnp.float32)
    # Output head: torch Linear(32, periods) — stored transposed as (32, periods).
    b = 1.0 / np.sqrt(HIDDEN)
    p['out_w'] = u(ks[10], (HIDDEN, periods), b)
    p['out_b'] = u(ks[11], (periods,), b)
    return p


if __name__ == "__main__":
    B, N, F, T = 2, 16, 4, 8    # batch, nodes ("spatial"), node_features, periods

    key = jax.random.PRNGKey(0)
    k_x, k_p = jax.random.split(key)

    x = jax.random.normal(k_x, (B, N, F, T), jnp.float32)

    # Deterministic ring graph (both directions), no self loops / duplicates.
    idx = jnp.arange(N, dtype=jnp.int32)
    nxt = (idx + 1) % N
    edge_index = jnp.stack([jnp.concatenate([idx, nxt]),
                            jnp.concatenate([nxt, idx])])        # [2, 2N]

    params = init_params(k_p, F, T)

    out = jax.block_until_ready(
        jax.jit(temporal_gnn_forward)(x, edge_index, params))
    ref = jax.block_until_ready(reference_forward(x, edge_index, params))

    assert out.shape == (B, N, T) and out.dtype == jnp.float32
    np.testing.assert_allclose(np.asarray(out), np.asarray(ref),
                               rtol=2e-2, atol=2e-2)
    print("KERNEL_OK")
</pallas_src>

<mosaic_0001>
module attributes {stable_mosaic.version = 11 : i64} {
  func.func @temporal_gnn_kernel(%arg0: memref<32x32xbf16, #tpu.memory_space<vmem>>, %arg1: memref<16x16xbf16, #tpu.memory_space<vmem>>, %arg2: memref<32x512xbf16, #tpu.memory_space<vmem>>, %arg3: memref<1x512xf32, #tpu.memory_space<vmem>>, %arg4: memref<256x32xbf16, #tpu.memory_space<vmem>>, %arg5: memref<32x128xbf16, #tpu.memory_space<vmem>>, %arg6: memref<1x128xf32, #tpu.memory_space<vmem>>, %arg7: memref<32x128xf32, #tpu.memory_space<vmem>>) attributes {dimension_semantics = [], scalar_prefetch = 0 : i64, scratch_operands = 0 : i64, tpu.core_type = #tpu.core_type<tc>} {
    %c0 = arith.constant 0 : index
    %c0_0 = arith.constant 0 : index
    %0 = vector.load %arg0[%c0, %c0_0] : memref<32x32xbf16, #tpu.memory_space<vmem>>, vector<32x32xbf16>
    %c0_1 = arith.constant 0 : index
    %c0_2 = arith.constant 0 : index
    %1 = vector.load %arg2[%c0_1, %c0_2] : memref<32x512xbf16, #tpu.memory_space<vmem>>, vector<32x512xbf16>
    %cst = arith.constant dense<0.000000e+00> : vector<32x512xf32>
    %2 = tpu.matmul %0, %1, %cst {dimension_numbers = #tpu.dot_dimension_numbers<[1], [0], [0], [1], [0, 0, 1, 1], [], []>} : vector<32x32xbf16>, vector<32x512xbf16>, vector<32x512xf32> -> vector<32x512xf32>
    %3 = arith.truncf %2 : vector<32x512xf32> to vector<32x512xbf16>
    %c0_3 = arith.constant 0 : index
    %c0_4 = arith.constant 0 : index
    %4 = vector.load %arg1[%c0_3, %c0_4] : memref<16x16xbf16, #tpu.memory_space<vmem>>, vector<16x16xbf16>
    %5 = vector.extract_strided_slice %3 {offsets = [0, 0], sizes = [16, 512], strides = [1, 1]} : vector<32x512xbf16> to vector<16x512xbf16>
    %cst_5 = arith.constant dense<0.000000e+00> : vector<16x512xf32>
    %6 = tpu.matmul %4, %5, %cst_5 {dimension_numbers = #tpu.dot_dimension_numbers<[1], [0], [0], [1], [0, 0, 1, 1], [], []>} : vector<16x16xbf16>, vector<16x512xbf16>, vector<16x512xf32> -> vector<16x512xf32>
    %7 = vector.extract_strided_slice %3 {offsets = [16, 0], sizes = [16, 512], strides = [1, 1]} : vector<32x512xbf16> to vector<16x512xbf16>
    %cst_6 = arith.constant dense<0.000000e+00> : vector<16x512xf32>
    %8 = tpu.matmul %4, %7, %cst_6 {dimension_numbers = #tpu.dot_dimension_numbers<[1], [0], [0], [1], [0, 0, 1, 1], [], []>} : vector<16x16xbf16>, vector<16x512xbf16>, vector<16x512xf32> -> vector<16x512xf32>
    %9 = tpu.concatenate %6, %8 in 0 : vector<16x512xf32>, vector<16x512xf32> -> vector<32x512xf32>
    %c0_7 = arith.constant 0 : index
    %c0_8 = arith.constant 0 : index
    %10 = vector.load %arg3[%c0_7, %c0_8] : memref<1x512xf32, #tpu.memory_space<vmem>>, vector<1x512xf32>
    %11 = vector.broadcast %10 : vector<1x512xf32> to vector<32x512xf32>
    %12 = arith.addf %9, %11 : vector<32x512xf32>
    %13 = vector.extract_strided_slice %12 {offsets = [0, 0], sizes = [32, 256], strides = [1, 1]} : vector<32x512xf32> to vector<32x256xf32>
    %14 = arith.negf %13 : vector<32x256xf32>
    %15 = math.exp %14 : vector<32x256xf32>
    %cst_9 = arith.constant 1.000000e+00 : f32
    %16 = vector.broadcast %cst_9 : f32 to vector<32x256xf32>
    %17 = arith.addf %16, %15 : vector<32x256xf32>
    %18 = arith.divf %16, %17 : vector<32x256xf32>
    %19 = vector.extract_strided_slice %12 {offsets = [0, 256], sizes = [32, 256], strides = [1, 1]} : vector<32x512xf32> to vector<32x256xf32>
    %20 = math.tanh %19 : vector<32x256xf32>
    %cst_10 = arith.constant 1.000000e+00 : f32
    %21 = vector.broadcast %cst_10 : f32 to vector<32x256xf32>
    %22 = arith.subf %21, %18 : vector<32x256xf32>
    %23 = arith.mulf %22, %20 : vector<32x256xf32>
    %24 = arith.truncf %23 : vector<32x256xf32> to vector<32x256xbf16>
    %c0_11 = arith.constant 0 : index
    %c0_12 = arith.constant 0 : index
    %25 = vector.load %arg4[%c0_11, %c0_12] : memref<256x32xbf16, #tpu.memory_space<vmem>>, vector<256x32xbf16>
    %cst_13 = arith.constant dense<0.000000e+00> : vector<32x32xf32>
    %26 = tpu.matmul %24, %25, %cst_13 {dimension_numbers = #tpu.dot_dimension_numbers<[1], [0], [0], [1], [0, 0, 1, 1], [], []>} : vector<32x256xbf16>, vector<256x32xbf16>, vector<32x32xf32> -> vector<32x32xf32>
    %cst_14 = arith.constant 0.000000e+00 : f32
    %27 = vector.broadcast %cst_14 : f32 to vector<32x32xf32>
    %28 = arith.maximumf %26, %27 : vector<32x32xf32>
    %29 = arith.truncf %28 : vector<32x32xf32> to vector<32x32xbf16>
    %c0_15 = arith.constant 0 : index
    %c0_16 = arith.constant 0 : index
    %30 = vector.load %arg5[%c0_15, %c0_16] : memref<32x128xbf16, #tpu.memory_space<vmem>>, vector<32x128xbf16>
    %cst_17 = arith.constant dense<0.000000e+00> : vector<32x128xf32>
    %31 = tpu.matmul %29, %30, %cst_17 {dimension_numbers = #tpu.dot_dimension_numbers<[1], [0], [0], [1], [0, 0, 1, 1], [], []>} : vector<32x32xbf16>, vector<32x128xbf16>, vector<32x128xf32> -> vector<32x128xf32>
    %c0_18 = arith.constant 0 : index
    %c0_19 = arith.constant 0 : index
    %32 = vector.load %arg6[%c0_18, %c0_19] : memref<1x128xf32, #tpu.memory_space<vmem>>, vector<1x128xf32>
    %33 = vector.broadcast %32 : vector<1x128xf32> to vector<32x128xf32>
    %34 = arith.addf %31, %33 : vector<32x128xf32>
    %c0_20 = arith.constant 0 : index
    %c0_21 = arith.constant 0 : index
    %35 = vector.load %arg7[%c0_20, %c0_21] : memref<32x128xf32, #tpu.memory_space<vmem>>, vector<32x128xf32>
    tpu.vector_store %arg7[%c0_20, %c0_21], %34 {strides = array<i32>} : memref<32x128xf32, #tpu.memory_space<vmem>>, vector<32x128xf32>,
    return
  }
}

</mosaic_0001>

<bundles_post_ra>
// kernel: tile.13
= control target key start
LH: loop header
LB: loop body
LE: loop exit
PB: predicated region body
PF: predicated region fallthrough
CT: control target
= control target key end

     0   :  { %s22_s0 = inlined_call_operand.vmem [shape: f32[32], index: 0, kind: input, shape index: {}]   ;;  %s23_s1 = inlined_call_operand.vmem [shape: f32[8,32], index: 1, kind: output, shape index: {}]  }
   0x1   :  { %v4_v0 = vld [vmem:[%s22_s0] ss:$0 sm:$0xff] }
   0x2   :  { %5 = vst [vmem:[%s23_s1] sm:$0xff] %v4_v0 }

// kernel: temporal_gnn_forward.1
= control target key start
LH: loop header
LB: loop body
LE: loop exit
PB: predicated region body
PF: predicated region fallthrough
CT: control target
= control target key end

     0   :  { %vm89_vm0 = vcmask 261120   ;;  %vm207_vm1 = vcmask 130048   ;;  %s1415_s2 = inlined_call_operand.vmem [shape: bf16[32,512], index: 2, kind: input, shape index: {}]   ;;  %s1416_s0 = inlined_call_operand.vmem [shape: bf16[32,32], index: 0, kind: input, shape index: {}]   ;;  %s1417_s1 = inlined_call_operand.vmem [shape: bf16[16,16], index: 1, kind: input, shape index: {}]   ;;  %s1418_s3 = inlined_call_operand.vmem [shape: f32[1,512], index: 3, kind: input, shape index: {}]   ;;  %s1419_s4 = inlined_call_operand.vmem [shape: bf16[256,32], index: 4, kind: input, shape index: {}]   ;;  %s1420_s6 = inlined_call_operand.vmem [shape: f32[1,128], index: 6, kind: input, shape index: {}]   ;;  %s1421_s5 = inlined_call_operand.vmem [shape: bf16[32,128], index: 5, kind: input, shape index: {}]   ;;  %s1422_s7 = inlined_call_operand.vmem [shape: f32[32,128], index: 7, kind: output, shape index: {}]  }
   0x1   :  { %v800_v0 = vld [vmem:[%s1415_s2 + $0x20] sm:$0xf]  ;;  %v924_v1 = vld [vmem:[%s1415_s2 + $0x2c] sm:$0xf0]  ;;  %v922_v5 = vld [vmem:[%s1415_s2 + $0x24] sm:$0xf] }
   0x2   :  { %v784_v2 = vld [vmem:[%s1415_s2] sm:$0xf]  ;;  %v801_v3 = vor.u32 %v924_v1, %v800_v0  ;;  %v920_v4 = vld [vmem:[%s1415_s2 + $0xc] sm:$0xf0]  ;;  %v802_v6 = vld [vmem:[%s1415_s2 + $0x30] sm:$0xf0] }
   0x3   :  { %v805_v7 = vor.u32 %v922_v5, %v802_v6  ;;  %v918_v8 = vld [vmem:[%s1415_s2 + $0x4] sm:$0xf]  ;;  %v786_v9 = vld [vmem:[%s1415_s2 + $0x10] sm:$0xf0]  ;;  %v785_v10 = vor.u32 %v920_v4, %v784_v2  ;;  %v808_v11 = vld [vmem:[%s1415_s2 + $0x28] sm:$0xf] }
   0x4   :  { %102 = vmatpush.bf16.msra.mxu3 %v801_v3  ;;  %v925_v12 = vld [vmem:[%s1415_s2 + $0x34] sm:$0xf0]  ;;  %v789_v13 = vor.u32 %v918_v8, %v786_v9  ;;  %v792_v15 = vld [vmem:[%s1415_s2 + $0x8] sm:$0xf]  ;;  %v923_v17 = vld [vmem:[%s1415_s2 + $0x2c] sm:$0xf] }
   0x5   :  { %121 = vmatpush.bf16.msra.mxu0 %v805_v7  ;;  %945 = vmatpush.bf16.msra.mxu1 %v805_v7  ;;  %v809_v14 = vor.u32 %v925_v12, %v808_v11  ;;  %v921_v16 = vld [vmem:[%s1415_s2 + $0x14] sm:$0xf0]  ;;  %v810_v18 = vld [vmem:[%s1415_s2 + $0x38] sm:$0xf0]  ;;  %v916_v19 = vld [vmem:[%s1416_s0] sm:$0xff] }
   0x6   :  { %v793_v20 = vor.u32 %v921_v16, %v792_v15  ;;  %v813_v21 = vor.u32 %v923_v17, %v810_v18  ;;  %v919_v22 = vld [vmem:[%s1415_s2 + $0xc] sm:$0xf]  ;;  %v794_v23 = vld [vmem:[%s1415_s2 + $0x18] sm:$0xf0]  ;;  %v926_v39 = vld [vmem:[%s1417_s1] sm:$0xff] }
   0x7   :  { %140 = vmatpush.bf16.msra.mxu2 %v809_v14  ;;  %v917_v24 = vld [vmem:[%s1416_s0 + $0x8] sm:$0xff]  ;;  %v797_v25 = vor.u32 %v919_v22, %v794_v23  ;;  %v1112_v11 = vld [vmem:[%s1418_s3] sm:$0xf]  ;;  %v934_v14 = vld [vmem:[%s1419_s4 + $0x38] sm:$0xff] }
   0x8   :  { %103 = vmatpush.bf16.msra.mxu3 %v785_v10  ;;  %v1115_v12 = vperm.slane %v1112_v11, 0  ;;  %v942_v15 = vld [vmem:[%s1419_s4 + $0x78] sm:$0xff] }
   0x9   :  { %122 = vmatpush.bf16.msra.mxu0 %v789_v13  ;;  %946 = vmatpush.bf16.msra.mxu1 %v789_v13  ;;  %v1118_v13 = vperm.slane %v1112_v11, 1 }
   0xb   :  { %814 = vmatmul.msk.bf16.vlgmr.msra.gmra.mxu3 %vm89_vm0, %v916_v19  ;;  %141 = vmatpush.bf16.msra.mxu2 %v793_v20  ;;  %v933_v20 = vld [vmem:[%s1419_s4 + $0x30] sm:$0xff] }
   0xc   :  { %159 = vmatpush.bf16.msrb.mxu3 %v813_v21  ;;  %816 = vmatmul.msk.bf16.vlgmr.msra.gmra.mxu0 %vm89_vm0, %v916_v19  ;;  %v941_v21 = vld [vmem:[%s1419_s4 + $0x70] sm:$0xff] }
   0xd   :  { %817 = vmatmul.msk.bf16.vlgmr.msra.gmra.mxu1 %vm89_vm0, %v917_v24 }
   0xe   :  { %818 = vmatmul.msk.bf16.vlgmr.msra.gmra.mxu2 %vm89_vm0, %v916_v19 }
  0x10   :  { %160 = vmatpush.bf16.msrb.mxu3 %v797_v25  ;;  %v940_v25 = vld [vmem:[%s1419_s4 + $0x68] sm:$0xff] }
  0x1b   :  { %815 = vmatmul.msk.bf16.gmra.mxu3 %vm89_vm0, %v917_v24 }
  0x1e   :  { %819 = vmatmul.msk.bf16.gmra.mxu2 %vm89_vm0, %v917_v24 }
  0x2b   :  { %820 = vmatmul.msk.bf16.vlgmr.msrb.gmra.mxu3 %vm89_vm0, %v916_v19 }
  0x3b   :  { %821 = vmatmul.msk.bf16.gmra.mxu3 %vm89_vm0, %v917_v24  ;;  %v932_v24 = vld [vmem:[%s1419_s4 + $0x28] sm:$0xff] }
  0x89   :  { %v124_v26 = vpop.f32.mrf.mxu0 }
  0x8a   :  { %v129_v36 = vpop.f32.mrf.mxu1 }
  0x8e   :  { %v105_v27 = vpop.f32.mrf.mxu3 }
  0x8f   :  { %v172_v29 = vpack.c.bf16 %v124_v26, %v105_v27 }
  0x91   :  { %v126_v28 = vpop.f32.mrf.mxu0  ;;  %v191_v32 = vunpack.c.l.b16 %v172_v29  ;;  %v192_v33 = vunpack.c.h.b16 %v172_v29  ;;  %v143_v45 = vpop.f32.mrf.mxu2 }
  0x92   :  { %v131_v41 = vpop.f32.mrf.mxu1 }
  0x96   :  { %v107_v30 = vpop.f32.mrf.mxu3 }
  0x97   :  { %v174_v31 = vpack.c.bf16 %v126_v28, %v107_v30  ;;  %v931_v30 = vld [vmem:[%s1419_s4 + $0x20] sm:$0xff] }
  0x99   :  { %v195_v34 = vunpack.c.l.b16 %v174_v31  ;;  %v196_v35 = vunpack.c.h.b16 %v174_v31  ;;  %v145_v53 = vpop.f32.mrf.mxu2  ;;  %v939_v31 = vld [vmem:[%s1419_s4 + $0x60] sm:$0xff] }
  0x9b   :  { %v199_v37 = vpack.c.b16 %v195_v34, %v191_v32  ;;  %v200_v38 = vpack.c.b16 %v196_v35, %v192_v33 }
  0x9d   :  { %218 = vmatpush.bf16.msrb.mxu0 %v199_v37  ;;  %232 = vmatpush.bf16.msrb.mxu1 %v200_v38  ;;  %v938_v37 = vld [vmem:[%s1419_s4 + $0x58] sm:$0xff] }
  0x9e   :  { %v110_v40 = vpop.f32.mrf.mxu3 }
  0x9f   :  { %v176_v42 = vpack.c.bf16 %v129_v36, %v110_v40  ;;  %v930_v36 = vld [vmem:[%s1419_s4 + $0x18] sm:$0xff] }
  0xa0   :  { %826 = vmatmul.msk.bf16.vlgmr.msrb.gmra.mxu0 %vm207_vm1, %v926_v39  ;;  %827 = vmatmul.msk.bf16.vlgmr.msrb.gmra.mxu1 %vm207_vm1, %v926_v39 }
  0xa1   :  { %v271_v46 = vunpack.c.l.b16 %v176_v42  ;;  %v272_v47 = vunpack.c.h.b16 %v176_v42  ;;  %v148_v63 = vpop.f32.mrf.mxu2 }
  0xa6   :  { %v112_v43 = vpop.f32.mrf.mxu3 }
  0xa7   :  { %v178_v44 = vpack.c.bf16 %v131_v41, %v112_v43 }
  0xa9   :  { %v275_v48 = vunpack.c.l.b16 %v178_v44  ;;  %v276_v49 = vunpack.c.h.b16 %v178_v44  ;;  %v150_v2 = vpop.f32.mrf.mxu2  ;;  %v929_v44 = vld [vmem:[%s1419_s4 + $0x10] sm:$0xff] }
  0xab   :  { %v279_v50 = vpack.c.b16 %v275_v48, %v271_v46  ;;  %v280_v51 = vpack.c.b16 %v276_v49, %v272_v47 }
  0xad   :  { %294 = vmatpush.bf16.msra.mxu0 %v279_v50  ;;  %308 = vmatpush.bf16.msra.mxu1 %v280_v51  ;;  %v928_v51 = vld [vmem:[%s1419_s4 + $0x8] sm:$0xff] }
  0xae   :  { %v162_v52 = vpop.f32.mrf.mxu3 }
  0xaf   :  { %v173_v54 = vpack.c.bf16 %v162_v52, %v143_v45  ;;  %v937_v45 = vld [vmem:[%s1419_s4 + $0x50] sm:$0xff]  ;;  %v936_v52 = vld [vmem:[%s1419_s4 + $0x48] sm:$0xff] }
  0xb0   :  { %830 = vmatmul.msk.bf16.vlgmr.msra.gmra.mxu0 %vm207_vm1, %v926_v39  ;;  %831 = vmatmul.msk.bf16.vlgmr.msra.gmra.mxu1 %vm207_vm1, %v926_v39 }
  0xb1   :  { %v193_v57 = vunpack.c.l.b16 %v173_v54  ;;  %v194_v58 = vunpack.c.h.b16 %v173_v54  ;;  %677 = vmatpush.bf16.msrb.mxu0 %v934_v14  ;;  %696 = vmatpush.bf16.msrb.mxu1 %v942_v15  ;;  %v1209_v15 = vperm.slane %v1112_v11, 2 }
  0xb5   :  { %678 = vmatpush.bf16.msrb.mxu0 %v933_v20  ;;  %697 = vmatpush.bf16.msrb.mxu1 %v941_v21  ;;  %v1216_v20 = vperm.slane %v1112_v11, 3 }
  0xb6   :  { %v164_v55 = vpop.f32.mrf.mxu3 }
  0xb7   :  { %v175_v56 = vpack.c.bf16 %v164_v55, %v145_v53 }
  0xb9   :  { %v197_v59 = vunpack.c.l.b16 %v175_v56  ;;  %v198_v60 = vunpack.c.h.b16 %v175_v56  ;;  %679 = vmatpush.bf16.msrb.mxu0 %v932_v24  ;;  %698 = vmatpush.bf16.msrb.mxu1 %v940_v25 }
  0xbb   :  { %v202_v61 = vpack.c.b16 %v198_v60, %v194_v58  ;;  %v201_v62 = vpack.c.b16 %v197_v59, %v193_v57  ;;  %v927_v59 = vld [vmem:[%s1419_s4] sm:$0xff] }
  0xbc   :  { %v935_v60 = vld [vmem:[%s1419_s4 + $0x40] sm:$0xff] }
  0xbd   :  { %246 = vmatpush.bf16.msrb.mxu2 %v201_v62  ;;  %260 = vmatpush.bf16.msra.mxu3 %v202_v61 }
  0xbe   :  { %v167_v0 = vpop.f32.mrf.mxu3  ;;  %680 = vmatpush.bf16.msrb.mxu0 %v931_v30  ;;  %699 = vmatpush.bf16.msrb.mxu1 %v939_v31 }
  0xbf   :  { %v177_v1 = vpack.c.bf16 %v167_v0, %v148_v63 }
  0xc0   :  { %828 = vmatmul.msk.bf16.vlgmr.msrb.gmra.mxu2 %vm207_vm1, %v926_v39  ;;  %829 = vmatmul.msk.bf16.vlgmr.msra.gmra.mxu3 %vm207_vm1, %v926_v39 }
  0xc1   :  { %v273_v5 = vunpack.c.l.b16 %v177_v1  ;;  %v274_v6 = vunpack.c.h.b16 %v177_v1 }
  0xc2   :  { %681 = vmatpush.bf16.msrb.mxu0 %v930_v36  ;;  %700 = vmatpush.bf16.msrb.mxu1 %v938_v37 }
  0xc6   :  { %v169_v3 = vpop.f32.mrf.mxu3  ;;  %682 = vmatpush.bf16.msrb.mxu0 %v929_v44  ;;  %701 = vmatpush.bf16.msrb.mxu1 %v937_v45 }
  0xc7   :  { %v179_v4 = vpack.c.bf16 %v169_v3, %v150_v2 }
  0xc9   :  { %v277_v7 = vunpack.c.l.b16 %v179_v4  ;;  %v278_v8 = vunpack.c.h.b16 %v179_v4 }
  0xca   :  { %683 = vmatpush.bf16.msrb.mxu0 %v928_v51  ;;  %702 = vmatpush.bf16.msrb.mxu1 %v936_v52 }
  0xcb   :  { %v281_v9 = vpack.c.b16 %v277_v7, %v273_v5  ;;  %v282_v10 = vpack.c.b16 %v278_v8, %v274_v6 }
  0xcd   :  { %322 = vmatpush.bf16.msra.mxu2 %v281_v9  ;;  %336 = vmatpush.bf16.msrb.mxu3 %v282_v10 }
  0xce   :  { %684 = vmatpush.bf16.msrb.mxu0 %v927_v59  ;;  %703 = vmatpush.bf16.msrb.mxu1 %v935_v60 }
  0xd0   :  { %832 = vmatmul.msk.bf16.vlgmr.msra.gmra.mxu2 %vm207_vm1, %v926_v39  ;;  %833 = vmatmul.msk.bf16.vlgmr.msrb.gmra.mxu3 %vm207_vm1, %v926_v39 }
 0x11d   :  { %v220_v16 = vpop.f32.mrf.mxu0  ;;  %v234_v17 = vpop.f32.mrf.mxu1 }
 0x11e   :  { %v353_v18 = vadd.f32 %v1115_v12, %v220_v16  ;;  %v354_v19 = vadd.f32 %v1118_v13, %v234_v17 }
 0x120   :  { %v834_v22 = vmul.f32 -1.442695, %v353_v18  ;;  %v835_v23 = vmul.f32 -1.442695, %v354_v19 }
 0x122   :  { %948 = vpow2.f32 %v834_v22 }
 0x123   :  { %950 = vpow2.f32 %v835_v23 }
 0x125   :  { %v222_v26 = vpop.f32.mrf.mxu0  ;;  %v236_v27 = vpop.f32.mrf.mxu1 }
 0x126   :  { %v357_v28 = vadd.f32 %v1115_v12, %v222_v26  ;;  %v358_v29 = vadd.f32 %v1118_v13, %v236_v27 }
 0x128   :  { %v836_v32 = vmul.f32 -1.442695, %v357_v28  ;;  %v837_v33 = vmul.f32 -1.442695, %v358_v29  ;;  %v949_v34 = vpop.eup %948 }
 0x129   :  { %v951_v35 = vpop.eup %950  ;;  %v1154_v38 = vadd.f32 1.0, %v949_v34 }
 0x12a   :  { %952 = vpow2.f32 %v836_v32  ;;  %v1156_v41 = vadd.f32 1.0, %v951_v35 }
 0x12b   :  { %954 = vpow2.f32 %v837_v33  ;;  %v410_v19 = vand.u32 2147483647, %v1154_v38  ;;  %v412_v23 = vand.u32 2147483648, %v1154_v38  ;;  %vm406_vm2 = vweird.f32 %v1154_v38 }
 0x12c   :  { %956 = vrcp.f32 %v1154_v38  ;;  %v425_v27 = vand.u32 2147483647, %v1156_v41  ;;  %v427_v28 = vand.u32 2147483648, %v1156_v41  ;;  %vm421_vm4 = vweird.f32 %v1156_v41 }
 0x12d   :  { %v296_v39 = vpop.f32.mrf.mxu0  ;;  %v310_v40 = vpop.f32.mrf.mxu1  ;;  %958 = vrcp.f32 %v1156_v41  ;;  %vm1236_vm6 = vcmp.eq.f32.partialorder %v410_v19, 8.507059e+37  ;;  %v413_v33 = vor.u32 1.1754944e-38, %v412_v23 }
 0x12e   :  { %v361_v42 = vadd.f32 %v1115_v12, %v296_v39  ;;  %v362_v43 = vadd.f32 %v1118_v13, %v310_v40  ;;  %vm1249_vm8 = vcmp.eq.f32.partialorder %v425_v27, 8.507059e+37  ;;  %v428_v40 = vor.u32 1.1754944e-38, %v427_v28 }
 0x130   :  { %v953_v46 = vpop.eup %952  ;;  %v838_v47 = vmul.f32 -1.442695, %v361_v42  ;;  %v839_v49 = vmul.f32 -1.442695, %v362_v43 }
 0x131   :  { %v1167_v48 = vadd.f32 1.0, %v953_v46  ;;  %v955_v50 = vpop.eup %954 }
 0x132   :  { %960 = vpow2.f32 %v838_v47  ;;  %v1177_v53 = vadd.f32 1.0, %v955_v50  ;;  %v1182_v58 = vpop.eup %956 }
 0x133   :  { %962 = vrcp.f32 %v1167_v48  ;;  %v1190_v61 = vpop.eup %958  ;;  %v402_v3 = vmul.f32 %v1182_v58, %v1154_v38  ;;  %vm407_vm3 = vweird.f32 %v1182_v58  ;;  %v440_v30 = vand.u32 2147483647, %v1167_v48 }
 0x134   :  { %964 = vpow2.f32 %v839_v49  ;;  %v417_v5 = vmul.f32 %v1190_v61, %v1156_v41  ;;  %vm422_vm5 = vweird.f32 %v1190_v61  ;;  %v442_v34 = vand.u32 2147483648, %v1167_v48  ;;  %vm1244_vm7 = vmor %vm406_vm2, %vm407_vm3 }
 0x135   :  { %v298_v54 = vpop.f32.mrf.mxu0  ;;  %v312_v55 = vpop.f32.mrf.mxu1  ;;  %966 = vrcp.f32 %v1177_v53  ;;  %v403_v9 = vsub.f32 1.0, %v402_v3  ;;  %vm1258_vm9 = vmor %vm421_vm4, %vm422_vm5  ;;  %vm436_vm10 = vweird.f32 %v1167_v48  ;;  %vm1267_vm12 = vcmp.eq.f32.partialorder %v440_v30, 8.507059e+37 }
 0x136   :  { %v365_v56 = vadd.f32 %v1115_v12, %v298_v54  ;;  %v366_v57 = vadd.f32 %v1118_v13, %v312_v55  ;;  %v418_v13 = vsub.f32 1.0, %v417_v5  ;;  %vm451_vm13 = vweird.f32 %v1177_v53 }
 0x137   :  { %v404_v21 = vmul.f32 %v1182_v58, %v403_v9  ;;  %v443_v52 = vor.u32 1.1754944e-38, %v442_v34  ;;  %v455_v55 = vand.u32 2147483647, %v1177_v53 }
 0x138   :  { %v840_v62 = vmul.f32 -1.442695, %v365_v56  ;;  %v841_v63 = vmul.f32 -1.442695, %v366_v57  ;;  %v961_v0 = vpop.eup %960  ;;  %v419_v26 = vmul.f32 %v1190_v61, %v418_v13  ;;  %v457_v56 = vand.u32 2147483648, %v1177_v53 }
 0x139   :  { %v1192_v1 = vpop.eup %962  ;;  %v1204_v8 = vadd.f32 1.0, %v961_v0  ;;  %v405_v31 = vadd.f32 %v1182_v58, %v404_v21  ;;  %vm456_vm2 = vcmp.eq.f32.partialorder %v455_v55, 8.507059e+37 }
 0x13a   :  { %968 = vpow2.f32 %v840_v62  ;;  %v965_v2 = vpop.eup %964  ;;  %v432_v6 = vmul.f32 %v1192_v1, %v1167_v48  ;;  %v420_v38 = vadd.f32 %v1190_v61, %v419_v26  ;;  %vm437_vm11 = vweird.f32 %v1192_v1 }
 0x13b   :  { %v1196_v4 = vpop.eup %966  ;;  %970 = vpow2.f32 %v841_v63  ;;  %v1206_v10 = vadd.f32 1.0, %v965_v2  ;;  %v409_v50 = vsel %vm1244_vm7, %v1182_v58, %v405_v31  ;;  %vm1289_vm15 = vmor %vm436_vm10, %vm437_vm11  ;;  %v458_v5 = vor.u32 1.1754944e-38, %v457_v56 }
 0x13c   :  { %v447_v7 = vmul.f32 %v1196_v4, %v1177_v53  ;;  %v433_v14 = vsub.f32 1.0, %v432_v6  ;;  %972 = vrcp.f32 %v1204_v8  ;;  %vm452_vm14 = vweird.f32 %v1196_v4 }
 0x13d   :  { %974 = vrcp.f32 %v1206_v10  ;;  %v424_v57 = vsel %vm1258_vm9, %v1190_v61, %v420_v38  ;;  %vm453_vm1 = vmor %vm451_vm13, %vm452_vm14  ;;  %v414_v3 = vsel %vm1236_vm6, %v413_v33, %v409_v50  ;;  %vm466_vm3 = vweird.f32 %v1204_v8 }
 0x13e   :  { %v448_v18 = vsub.f32 1.0, %v447_v7  ;;  %v434_v11 = vmul.f32 %v1192_v1, %v433_v14  ;;  %v529_v14 = vsub.f32 1.0, %v414_v3  ;;  %v470_v23 = vand.u32 2147483647, %v1204_v8 }
 0x13f   :  { %vm481_vm4 = vweird.f32 %v1206_v10  ;;  %v485_v28 = vand.u32 2147483647, %v1206_v10 }
 0x140   :  { %v969_v12 = vpop.eup %968  ;;  %v449_v29 = vmul.f32 %v1196_v4, %v448_v18  ;;  %v435_v45 = vadd.f32 %v1192_v1, %v434_v11  ;;  %v487_v11 = vand.u32 2147483648, %v1206_v10  ;;  %vm1327_vm6 = vcmp.eq.f32.partialorder %v470_v23, 8.507059e+37 }
 0x141   :  { %v1211_v16 = vadd.f32 1.0, %v969_v12  ;;  %v971_v17 = vpop.eup %970  ;;  %vm1358_vm14 = vcmp.eq.f32.partialorder %v485_v28, 8.507059e+37 }
 0x142   :  { %v1221_v25 = vadd.f32 1.0, %v971_v17  ;;  %v1241_v35 = vpop.eup %972  ;;  %v450_v49 = vadd.f32 %v1196_v4, %v449_v29  ;;  %v439_v61 = vsel %vm1289_vm15, %v1192_v1, %v435_v45  ;;  %v429_v1 = vsel %vm1249_vm8, %v428_v40, %v424_v57 }
 0x143   :  { %v248_v22 = vpop.f32.mrf.mxu2  ;;  %v262_v24 = vpop.f32.mrf.mxu3  ;;  %976 = vrcp.f32 %v1211_v16  ;;  %v462_v62 = vmul.f32 %v1241_v35, %v1204_v8  ;;  %v444_v53 = vsel %vm1267_vm12, %v443_v52, %v439_v61  ;;  %v530_v17 = vsub.f32 1.0, %v429_v1 }
 0x144   :  { %978 = vrcp.f32 %v1221_v25  ;;  %v355_v36 = vadd.f32 %v1209_v15, %v248_v22  ;;  %v1253_v42 = vpop.eup %974  ;;  %v356_v43 = vadd.f32 %v1216_v20, %v262_v24  ;;  %v454_v2 = vsel %vm453_vm1, %v1196_v4, %v450_v49 }
 0x145   :  { %v477_v48 = vmul.f32 %v1253_v42, %v1206_v10  ;;  %v463_v6 = vsub.f32 1.0, %v462_v62  ;;  %v459_v9 = vsel %vm456_vm2, %v458_v5, %v454_v2  ;;  %v531_v19 = vsub.f32 1.0, %v444_v53 }
 0x146   :  { %980 = vtanh.f32 %v355_v36  ;;  %v472_v24 = vand.u32 2147483648, %v1204_v8  ;;  %v532_v27 = vsub.f32 1.0, %v459_v9  ;;  %vm467_vm5 = vweird.f32 %v1241_v35 }
 0x147   :  { %982 = vtanh.f32 %v356_v43  ;;  %v478_v13 = vsub.f32 1.0, %v477_v48  ;;  %v464_v32 = vmul.f32 %v1241_v35, %v463_v6  ;;  %vm496_vm7 = vweird.f32 %v1211_v16  ;;  %vm1341_vm10 = vmor %vm466_vm3, %vm467_vm5 }
 0x148   :  { %v502_v45 = vand.u32 2147483648, %v1211_v16  ;;  %vm482_vm8 = vweird.f32 %v1253_v42  ;;  %vm511_vm11 = vweird.f32 %v1221_v25  ;;  %v473_v57 = vor.u32 1.1754944e-38, %v472_v24 }
 0x149   :  { %v1265_v46 = vpop.eup %976  ;;  %v479_v37 = vmul.f32 %v1253_v42, %v478_v13  ;;  %v465_v49 = vadd.f32 %v1241_v35, %v464_v32  ;;  %vm1354_vm13 = vmor %vm481_vm4, %vm482_vm8  ;;  %v515_v61 = vand.u32 2147483647, %v1221_v25 }
 0x14a   :  { %v1274_v41 = vpop.eup %978  ;;  %v492_v63 = vmul.f32 %v1265_v46, %v1211_v16  ;;  %vm497_vm9 = vweird.f32 %v1265_v46 }
 0x14b   :  { %v250_v51 = vpop.f32.mrf.mxu2  ;;  %v264_v54 = vpop.f32.mrf.mxu3  ;;  %v507_v0 = vmul.f32 %v1274_v41, %v1221_v25  ;;  %v480_v52 = vadd.f32 %v1253_v42, %v479_v37  ;;  %vm512_vm12 = vweird.f32 %v1274_v41  ;;  %vm1369_vm15 = vmor %vm496_vm7, %vm497_vm9  ;;  %v469_v48 = vsel %vm1341_vm10, %v1241_v35, %v465_v49 }
 0x14c   :  { %v359_v59 = vadd.f32 %v1209_v15, %v250_v51  ;;  %v360_v60 = vadd.f32 %v1216_v20, %v264_v54  ;;  %v493_v7 = vsub.f32 1.0, %v492_v63  ;;  %v981_v12 = vpop.eup %980  ;;  %vm513_vm1 = vmor %vm511_vm11, %vm512_vm12  ;;  %vm516_vm3 = vcmp.eq.f32.partialorder %v515_v61, 8.507059e+37 }
 0x14d   :  { %v508_v4 = vsub.f32 1.0, %v507_v0  ;;  %v983_v18 = vpop.eup %982  ;;  %v537_v30 = vmul.f32 %v981_v12, %v529_v14  ;;  %v484_v0 = vsel %vm1354_vm13, %v1253_v42, %v480_v52 }
 0x14e   :  { %984 = vtanh.f32 %v359_v59  ;;  %v494_v33 = vmul.f32 %v1265_v46, %v493_v7  ;;  %v538_v34 = vmul.f32 %v983_v18, %v530_v17  ;;  %v500_v59 = vand.u32 2147483647, %v1211_v16 }
 0x14f   :  { %986 = vtanh.f32 %v360_v60  ;;  %v509_v38 = vmul.f32 %v1274_v41, %v508_v4  ;;  %v517_v60 = vand.u32 2147483648, %v1221_v25  ;;  %v503_v16 = vor.u32 1.1754944e-38, %v502_v45 }
 0x150   :  { %v495_v50 = vadd.f32 %v1265_v46, %v494_v33  ;;  %vm501_vm2 = vcmp.eq.f32.partialorder %v500_v59, 8.507059e+37 }
 0x151   :  { %v510_v54 = vadd.f32 %v1274_v41, %v509_v38  ;;  %v518_v35 = vor.u32 1.1754944e-38, %v517_v60 }
 0x153   :  { %v324_v21 = vpop.f32.mrf.mxu2  ;;  %v338_v22 = vpop.f32.mrf.mxu3  ;;  %v514_v2 = vsel %vm513_vm1, %v1274_v41, %v510_v54 }
 0x154   :  { %v985_v26 = vpop.eup %984  ;;  %v363_v43 = vadd.f32 %v1209_v15, %v324_v21  ;;  %v364_v47 = vadd.f32 %v1216_v20, %v338_v22  ;;  %v519_v1 = vsel %vm516_vm3, %v518_v35, %v514_v2  ;;  %v944_v21 = vld [vmem:[%s1421_s5 + $0x8] sm:$0xff]  ;;  %v943_v22 = vld [vmem:[%s1421_s5] sm:$0xff] }
 0x155   :  { %v987_v29 = vpop.eup %986  ;;  %v539_v31 = vmul.f32 %v985_v26, %v531_v19  ;;  %v536_v12 = vsub.f32 1.0, %v519_v1  ;;  %753 = vmatpush.bf16.msrb.mxu2 %v944_v21 }
 0x156   :  { %v540_v36 = vmul.f32 %v987_v29, %v532_v27  ;;  %988 = vtanh.f32 %v363_v43 }
 0x157   :  { %v545_v39 = vpack.c.bf16 %v539_v31, %v537_v30  ;;  %990 = vtanh.f32 %v364_v47 }
 0x158   :  { %v546_v44 = vpack.c.bf16 %v540_v36, %v538_v34 }
 0x159   :  { %685 = vmatmul.bf16.vlgmr.msrb.gmra.mxu0 %v545_v39  ;;  %754 = vmatpush.bf16.msrb.mxu2 %v943_v22 }
 0x15a   :  { %704 = vmatmul.bf16.vlgmr.msrb.gmra.mxu1 %v546_v44  ;;  %v947_v44 = vld [vmem:[%s1420_s6] ss:$0 sm:$0xff] }
 0x15b   :  { %v326_v55 = vpop.f32.mrf.mxu2  ;;  %v340_v56 = vpop.f32.mrf.mxu3 }
 0x15c   :  { %v367_v62 = vadd.f32 %v1209_v15, %v326_v55  ;;  %v368_v63 = vadd.f32 %v1216_v20, %v340_v56  ;;  %v499_v15 = vsel %vm1369_vm15, %v1265_v46, %v495_v50  ;;  %v488_v20 = vor.u32 1.1754944e-38, %v487_v11  ;;  %v989_v5 = vpop.eup %988 }
 0x15d   :  { %v474_v46 = vsel %vm1327_vm6, %v473_v57, %v469_v48  ;;  %v504_v3 = vsel %vm501_vm2, %v503_v16, %v499_v15  ;;  %v991_v53 = vpop.eup %990 }
 0x15e   :  { %992 = vtanh.f32 %v367_v62  ;;  %v489_v25 = vsel %vm1358_vm14, %v488_v20, %v484_v0  ;;  %v533_v6 = vsub.f32 1.0, %v474_v46  ;;  %v535_v7 = vsub.f32 1.0, %v504_v3 }
 0x15f   :  { %994 = vtanh.f32 %v368_v63  ;;  %v534_v42 = vsub.f32 1.0, %v489_v25 }
 0x160   :  { %v541_v13 = vmul.f32 %v989_v5, %v533_v6 }
 0x161   :  { %v542_v17 = vmul.f32 %v991_v53, %v534_v42 }
 0x164   :  { %v993_v9 = vpop.eup %992 }
 0x165   :  { %v995_v41 = vpop.eup %994  ;;  %v543_v14 = vmul.f32 %v993_v9, %v535_v7 }
 0x166   :  { %v544_v4 = vmul.f32 %v995_v41, %v536_v12 }
 0x167   :  { %v547_v18 = vpack.c.bf16 %v543_v14, %v541_v13 }
 0x168   :  { %v548_v19 = vpack.c.bf16 %v544_v4, %v542_v17 }
 0x169   :  { %690 = vmatmul.bf16.gmra.mxu0 %v547_v18 }
 0x16a   :  { %709 = vmatmul.bf16.gmra.mxu1 %v548_v19 }
 0x1d6   :  { %v686_v23 = vpop.f32.mrf.mxu0 }
 0x1d7   :  { %v705_v24 = vpop.f32.mrf.mxu1 }
 0x1d8   :  { %v706_v26 = vadd.f32 %v705_v24, %v686_v23 }
 0x1da   :  { %v715_v29 = vmax.f32 %v706_v26, 0.0 }
 0x1de   :  { %v688_v27 = vpop.f32.mrf.mxu0 }
 0x1df   :  { %v707_v28 = vpop.f32.mrf.mxu1 }
 0x1e0   :  { %v708_v11 = vadd.f32 %v707_v28, %v688_v27 }
 0x1e2   :  { %v716_v30 = vmax.f32 %v708_v11, 0.0 }
 0x1e4   :  { %v719_v31 = vpack.c.bf16 %v716_v30, %v715_v29 }
 0x1e6   :  { %914 = vmatmul.msk.bf16.vlgmr.msrb.gmra.mxu2 %vm89_vm0, %v719_v31  ;;  %v691_v32 = vpop.f32.mrf.mxu0 }
 0x1e7   :  { %v710_v33 = vpop.f32.mrf.mxu1 }
 0x1e8   :  { %v711_v34 = vadd.f32 %v710_v33, %v691_v32 }
 0x1ea   :  { %v717_v39 = vmax.f32 %v711_v34, 0.0 }
 0x1ee   :  { %v693_v36 = vpop.f32.mrf.mxu0 }
 0x1ef   :  { %v712_v37 = vpop.f32.mrf.mxu1 }
 0x1f0   :  { %v713_v38 = vadd.f32 %v712_v37, %v693_v36 }
 0x1f2   :  { %v718_v40 = vmax.f32 %v713_v38, 0.0 }
 0x1f4   :  { %v720_v43 = vpack.c.bf16 %v718_v40, %v717_v39 }
 0x1f6   :  { %915 = vmatmul.msk.bf16.gmra.mxu2 %vm89_vm0, %v720_v43 }
 0x269   :  { %v756_v45 = vpop.f32.mrf.mxu2 }
 0x26a   :  { %v757_v47 = vadd.f32 %v947_v44, %v756_v45 }
 0x26c   :  { %766 = vst [vmem:[%s1422_s7] sm:$0xff] %v757_v47 }
 0x271   :  { %v758_v49 = vpop.f32.mrf.mxu2 }
 0x272   :  { %v759_v50 = vadd.f32 %v947_v44, %v758_v49 }
 0x274   :  { %767 = vst [vmem:[%s1422_s7 + $0x8] sm:$0xff] %v759_v50 }
 0x279   :  { %v761_v51 = vpop.f32.mrf.mxu2 }
 0x27a   :  { %v762_v52 = vadd.f32 %v947_v44, %v761_v51 }
 0x27c   :  { %768 = vst [vmem:[%s1422_s7 + $0x10] sm:$0xff] %v762_v52 }
 0x281   :  { %v763_v54 = vpop.f32.mrf.mxu2 }
 0x282   :  { %v764_v55 = vadd.f32 %v947_v44, %v763_v54 }
 0x284   :  { %769 = vst [vmem:[%s1422_s7 + $0x18] sm:$0xff] %v764_v55 }

</bundles_post_ra>
